<compile_context>
chip_gen: v6e
topology: v6e:2x2x1
jax: 0.10.0
libtpu: 0.0.40
codegen_flags: <defaults>
</compile_context>

<pallas_src>
import math

import jax
import jax.numpy as jnp
import numpy as np
from jax.experimental import pallas as pl
from jax.experimental.pallas import tpu as pltpu


def _make_gat_kernel(bt, n, u, v, f, alpha):
    """bt batches per grid step; all shape params are Python ints (no captured arrays)."""

    def kernel(hf_ref, wt_ref, a_ref, bias_ref, out_ref):
        hf = hf_ref[...]          # (bt*n, Din)   flattened batch block of h
        wt = wt_ref[...]          # (Din, F)      W^T
        a = a_ref[...]            # (F, 2)        columns [a1, a2]
        bias = bias_ref[...]      # (bt, u, v)    additive mask: 0 or -9e15

        # --- fused MXU matmuls over the whole batch block ---------------------
        wh_flat = jnp.dot(hf, wt, preferred_element_type=jnp.float32)      # (bt*n, F)
        s_flat = jnp.dot(wh_flat, a, preferred_element_type=jnp.float32)   # (bt*n, 2)

        wh = wh_flat.reshape(bt, n, f)   # (bt, n, F)
        s = s_flat.reshape(bt, n, 2)     # (bt, n, 2)

        leaky = lambda x: jnp.where(x > 0, x, alpha * x)

        # column-form scores for the U nodes, row-form scores for the V nodes
        s1u = s[:, :u, 0:1]                          # (bt, u, 1)
        s2u = s[:, :u, 1:2]                          # (bt, u, 1)
        sv_row = jnp.swapaxes(s[:, u:, :], 1, 2)     # (bt, 2, v)  (tiny XLU transpose)
        s1v = sv_row[:, 0:1, :]                      # (bt, 1, v)
        s2v = sv_row[:, 1:2, :]                      # (bt, 1, v)

        e = leaky(s1u + s2v) + bias                  # (bt, u, v)  masked edges -> ~-9e15
        e_self_u = leaky(s1u + s2u)                  # (bt, u, 1)
        e_self_v = leaky(s1v + s2v)                  # (bt, 1, v)

        wh_u = wh[:, :u, :]                          # (bt, u, F)
        wh_v = wh[:, u:, :]                          # (bt, v, F)

        # --- attentionU = softmax([e | e_self_u], axis=-1), concat-free --------
        m_u = jnp.maximum(jnp.max(e, axis=2, keepdims=True), e_self_u)      # (bt, u, 1)
        pu = jnp.exp(e - m_u)                                               # (bt, u, v)
        pu_self = jnp.exp(e_self_u - m_u)                                   # (bt, u, 1)
        inv_u = 1.0 / (jnp.sum(pu, axis=2, keepdims=True) + pu_self)        # (bt, u, 1)
        attU = pu * inv_u                                                   # (bt, u, v)
        attU_self = pu_self * inv_u                                         # (bt, u, 1)

        # --- attentionV = softmax([e ; e_self_v], axis over u), concat-free ----
        m_v = jnp.maximum(jnp.max(e, axis=1, keepdims=True), e_self_v)      # (bt, 1, v)
        pv = jnp.exp(e - m_v)                                               # (bt, u, v)
        pv_self = jnp.exp(e_self_v - m_v)                                   # (bt, 1, v)
        inv_v = 1.0 / (jnp.sum(pv, axis=1, keepdims=True) + pv_self)        # (bt, 1, v)
        attV = pv * inv_v                                                   # (bt, u, v)
        attV_self = jnp.swapaxes(pv_self * inv_v, 1, 2)                     # (bt, v, 1)

        # --- aggregation (batched MXU matmuls, no explicit transposes) ---------
        hu = jnp.einsum('buv,bvf->buf', attU, wh_v,
                        preferred_element_type=jnp.float32) + wh_u * attU_self
        hv = jnp.einsum('buv,buf->bvf', attV, wh_u,
                        preferred_element_type=jnp.float32) + attV_self * wh_v

        # --- ELU epilogue, single full-block store ------------------------------
        hp = jnp.concatenate([hu, hv], axis=1)                              # (bt, n, F)
        out_ref[...] = jnp.where(hp > 0, hp, jnp.exp(hp) - 1.0)

    return kernel


def gat_forward(h, wt, a_packed, adj_bool, *, u, alpha, block_b=64):
    """h: (B, N, Din); wt = W^T: (Din, F); a_packed: (F, 2); adj_bool: (B, u, v) bool."""
    B, N, Din = h.shape
    F_ = wt.shape[1]
    v = N - u

    # batch block size: amortize per-step overhead; keep flattened-h block sublane-aligned
    bt = max(1, min(block_b, B))
    if bt < B:
        g = 8 // math.gcd(N, 8)          # smallest bt multiple with (bt*N) % 8 == 0
        bt = ((bt + g - 1) // g) * g
    Bp = ((B + bt - 1) // bt) * bt

    # precompute the additive mask bias in the wrapper (no compare+select in the kernel)
    adj_bias = jnp.where(adj_bool, -9e15, 0.0).astype(jnp.float32)

    if Bp != B:                          # zero-padded batches are computed then discarded
        h = jnp.pad(h, ((0, Bp - B), (0, 0), (0, 0)))
        adj_bias = jnp.pad(adj_bias, ((0, Bp - B), (0, 0), (0, 0)))

    h_flat = h.reshape(Bp * N, Din)      # flatten batch for one fused Wh matmul per block

    kernel = _make_gat_kernel(bt, N, u, v, F_, float(alpha))
    out = pl.pallas_call(
        kernel,
        out_shape=jax.ShapeDtypeStruct((Bp, N, F_), jnp.float32),
        grid_spec=pltpu.PrefetchScalarGridSpec(
            num_scalar_prefetch=0,
            grid=(Bp // bt,),
            in_specs=[
                pl.BlockSpec((bt * N, Din), lambda b: (b, 0)),     # flattened h block
                pl.BlockSpec((Din, F_), lambda b: (0, 0)),         # W^T (resident)
                pl.BlockSpec((F_, 2), lambda b: (0, 0)),           # packed a (resident)
                pl.BlockSpec((bt, u, v), lambda b: (b, 0, 0)),     # additive adj bias
            ],
            out_specs=pl.BlockSpec((bt, N, F_), lambda b: (b, 0, 0)),
        ),
        compiler_params=pltpu.CompilerParams(
            dimension_semantics=("parallel",)),                    # batches independent
    )(h_flat, wt, a_packed, adj_bias)
    return out[:B]


def _reference(h, wt, a_w, adj_bool, *, u, alpha):
    """Pure-JAX mirror of the PyTorch forward (eval mode)."""
    B, N, Din = h.shape
    F_ = wt.shape[1]
    Wh = jnp.einsum('bnd,df->bnf', h, wt)
    a1, a2 = a_w[0, :F_], a_w[0, F_:]
    leaky = lambda x: jnp.where(x > 0, x, alpha * x)
    s1 = jnp.einsum('bnf,f->bn', Wh, a1)
    s2 = jnp.einsum('bnf,f->bn', Wh, a2)
    e = leaky(s1[:, :u, None] + s2[:, None, u:])            # (B,u,v)
    e_self = leaky(s1 + s2)                                 # (B,N)
    e = jnp.where(adj_bool, -9e15, e)
    attU = jax.nn.softmax(
        jnp.concatenate([e, e_self[:, :u, None]], axis=2), axis=2)   # (B,u,v+1)
    attV = jnp.swapaxes(
        jax.nn.softmax(jnp.concatenate([e, e_self[:, None, u:]], axis=1), axis=1),
        1, 2)                                                          # (B,v,u+1)
    hu = jnp.einsum('buv,bvf->buf', attU[:, :, :-1], Wh[:, u:, :]) \
        + Wh[:, :u, :] * attU[:, :, -1:]
    hv = jnp.einsum('bvu,buf->bvf', attV[:, :, :-1], Wh[:, :u, :]) \
        + attV[:, :, -1:] * Wh[:, u:, :]
    hp = jnp.concatenate([hu, hv], axis=1)
    return jnp.where(hp > 0, hp, jnp.exp(hp) - 1.0)


if __name__ == "__main__":
    key = jax.random.PRNGKey(0)
    B = 2
    in_features = 16
    out_features = 32
    u_size = 3
    u = u_size + 1          # 4  (opts.u_size + 1)
    v = 8
    N = u + v               # 12 graph nodes
    alpha = 0.2             # LeakyReLU negative slope

    k1, k2, k3, k4 = jax.random.split(key, 4)
    h = jax.random.normal(k1, (B, N, in_features), dtype=jnp.float32)

    # Deterministic xavier_uniform(gain=1.414) style init (synthetic, not a checkpoint).
    lim_w = 1.414 * np.sqrt(6.0 / (in_features + out_features))
    W = jax.random.uniform(k2, (out_features, in_features), jnp.float32, -lim_w, lim_w)
    wt = W.T                                                  # (Din, F)

    lim_a = 1.414 * np.sqrt(6.0 / (2 * out_features + 1))
    a_w = jax.random.uniform(k3, (1, 2 * out_features), jnp.float32, -lim_a, lim_a)
    a_packed = jnp.stack([a_w[0, :out_features], a_w[0, out_features:]], axis=1)  # (F, 2)

    adj_bool = jax.random.bernoulli(k4, 0.3, (B, u, v))

    out = gat_forward(h, wt, a_packed, adj_bool, u=u, alpha=alpha)
    out = jax.block_until_ready(out)

    ref = _reference(h, wt, a_w, adj_bool, u=u, alpha=alpha)
    np.testing.assert_allclose(np.asarray(out), np.asarray(ref), rtol=1e-5, atol=1e-5)

    print("KERNEL_OK")
</pallas_src>

<mosaic_0001>
module attributes {stable_mosaic.version = 11 : i64} {
  func.func @kernel(%arg0: i32, %arg1: memref<24x16xf32, #tpu.memory_space<vmem>>, %arg2: memref<16x32xf32, #tpu.memory_space<vmem>>, %arg3: memref<32x2xf32, #tpu.memory_space<vmem>>, %arg4: memref<2x4x8xf32, #tpu.memory_space<vmem>>, %arg5: memref<2x12x32xf32, #tpu.memory_space<vmem>>) attributes {dimension_semantics = [#tpu.dimension_semantics<parallel>], iteration_bounds = array<i64: 1>, scalar_prefetch = 0 : i64, scratch_operands = 0 : i64, tpu.core_type = #tpu.core_type<tc>, window_params = [{transform_indices = @transform_0, window_bounds = array<i64: 24, 16>}, {pipeline_mode = #tpu.pipeline_mode<synchronous>, transform_indices = @transform_1, window_bounds = array<i64: 16, 32>}, {pipeline_mode = #tpu.pipeline_mode<synchronous>, transform_indices = @transform_2, window_bounds = array<i64: 32, 2>}, {transform_indices = @transform_3, window_bounds = array<i64: 2, 4, 8>}, {transform_indices = @transform_4, window_bounds = array<i64: 2, 12, 32>}]} {
    %c0 = arith.constant 0 : index
    %c0_0 = arith.constant 0 : index
    %0 = vector.load %arg1[%c0, %c0_0] : memref<24x16xf32, #tpu.memory_space<vmem>>, vector<24x16xf32>
    %c0_1 = arith.constant 0 : index
    %c0_2 = arith.constant 0 : index
    %1 = vector.load %arg2[%c0_1, %c0_2] : memref<16x32xf32, #tpu.memory_space<vmem>>, vector<16x32xf32>
    %c0_3 = arith.constant 0 : index
    %c0_4 = arith.constant 0 : index
    %2 = vector.load %arg3[%c0_3, %c0_4] : memref<32x2xf32, #tpu.memory_space<vmem>>, vector<32x2xf32>
    %c0_5 = arith.constant 0 : index
    %c0_6 = arith.constant 0 : index
    %c0_7 = arith.constant 0 : index
    %3 = vector.load %arg4[%c0_5, %c0_6, %c0_7] : memref<2x4x8xf32, #tpu.memory_space<vmem>>, vector<2x4x8xf32>
    %cst = arith.constant dense<0.000000e+00> : vector<24x32xf32>
    %4 = tpu.matmul %0, %1, %cst {dimension_numbers = #tpu.dot_dimension_numbers<[1], [0], [0], [1], [0, 0, 1, 1], [], []>} : vector<24x16xf32>, vector<16x32xf32>, vector<24x32xf32> -> vector<24x32xf32>
    %cst_8 = arith.constant dense<0.000000e+00> : vector<24x2xf32>
    %5 = tpu.matmul %4, %2, %cst_8 {dimension_numbers = #tpu.dot_dimension_numbers<[1], [0], [0], [1], [0, 0, 1, 1], [], []>} : vector<24x32xf32>, vector<32x2xf32>, vector<24x2xf32> -> vector<24x2xf32>
    %6 = vector.shape_cast %4 : vector<24x32xf32> to vector<2x12x32xf32>
    %7 = vector.shape_cast %5 : vector<24x2xf32> to vector<2x12x2xf32>
    %8 = vector.extract_strided_slice %7 {offsets = [0, 0, 0], sizes = [2, 4, 1], strides = [1, 1, 1]} : vector<2x12x2xf32> to vector<2x4x1xf32>
    %9 = vector.extract_strided_slice %7 {offsets = [0, 0, 1], sizes = [2, 4, 1], strides = [1, 1, 1]} : vector<2x12x2xf32> to vector<2x4x1xf32>
    %10 = vector.extract_strided_slice %7 {offsets = [0, 4, 0], sizes = [2, 8, 2], strides = [1, 1, 1]} : vector<2x12x2xf32> to vector<2x8x2xf32>
    %11 = tpu.transpose %10, [0, 2, 1] : vector<2x8x2xf32> -> vector<2x2x8xf32>
    %12 = vector.extract_strided_slice %11 {offsets = [0, 0, 0], sizes = [2, 1, 8], strides = [1, 1, 1]} : vector<2x2x8xf32> to vector<2x1x8xf32>
    %13 = vector.extract_strided_slice %11 {offsets = [0, 1, 0], sizes = [2, 1, 8], strides = [1, 1, 1]} : vector<2x2x8xf32> to vector<2x1x8xf32>
    %14 = vector.broadcast %8 : vector<2x4x1xf32> to vector<2x4x8xf32>
    %15 = vector.broadcast %13 : vector<2x1x8xf32> to vector<2x4x8xf32>
    %16 = arith.addf %14, %15 : vector<2x4x8xf32>
    %cst_9 = arith.constant 0.000000e+00 : f32
    %17 = vector.broadcast %cst_9 : f32 to vector<2x4x8xf32>
    %18 = arith.cmpf ogt, %16, %17 : vector<2x4x8xf32>
    %cst_10 = arith.constant 2.000000e-01 : f32
    %19 = vector.broadcast %cst_10 : f32 to vector<2x4x8xf32>
    %20 = arith.mulf %19, %16 : vector<2x4x8xf32>
    %21 = arith.select %18, %16, %20 : vector<2x4x8xi1>, vector<2x4x8xf32>
    %22 = arith.addf %21, %3 : vector<2x4x8xf32>
    %23 = arith.addf %8, %9 : vector<2x4x1xf32>
    %cst_11 = arith.constant 0.000000e+00 : f32
    %24 = vector.broadcast %cst_11 : f32 to vector<2x4x1xf32>
    %25 = arith.cmpf ogt, %23, %24 : vector<2x4x1xf32>
    %cst_12 = arith.constant 2.000000e-01 : f32
    %26 = vector.broadcast %cst_12 : f32 to vector<2x4x1xf32>
    %27 = arith.mulf %26, %23 : vector<2x4x1xf32>
    %28 = arith.select %25, %23, %27 : vector<2x4x1xi1>, vector<2x4x1xf32>
    %29 = arith.addf %12, %13 : vector<2x1x8xf32>
    %cst_13 = arith.constant 0.000000e+00 : f32
    %30 = vector.broadcast %cst_13 : f32 to vector<2x1x8xf32>
    %31 = arith.cmpf ogt, %29, %30 : vector<2x1x8xf32>
    %cst_14 = arith.constant 2.000000e-01 : f32
    %32 = vector.broadcast %cst_14 : f32 to vector<2x1x8xf32>
    %33 = arith.mulf %32, %29 : vector<2x1x8xf32>
    %34 = arith.select %31, %29, %33 : vector<2x1x8xi1>, vector<2x1x8xf32>
    %35 = vector.extract_strided_slice %6 {offsets = [0, 0, 0], sizes = [2, 4, 32], strides = [1, 1, 1]} : vector<2x12x32xf32> to vector<2x4x32xf32>
    %36 = vector.extract_strided_slice %6 {offsets = [0, 4, 0], sizes = [2, 8, 32], strides = [1, 1, 1]} : vector<2x12x32xf32> to vector<2x8x32xf32>
    %cst_15 = arith.constant dense<0xFF800000> : vector<2x4xf32>
    %37 = vector.multi_reduction <maximumf>, %22, %cst_15 [2] : vector<2x4x8xf32> to vector<2x4xf32>
    %38 = vector.shape_cast %37 : vector<2x4xf32> to vector<2x4x1xf32>
    %39 = arith.maximumf %38, %28 : vector<2x4x1xf32>
    %40 = vector.broadcast %39 : vector<2x4x1xf32> to vector<2x4x8xf32>
    %41 = arith.subf %22, %40 : vector<2x4x8xf32>
    %42 = math.exp %41 : vector<2x4x8xf32>
    %43 = arith.subf %28, %39 : vector<2x4x1xf32>
    %44 = math.exp %43 : vector<2x4x1xf32>
    %cst_16 = arith.constant dense<0.000000e+00> : vector<2x4xf32>
    %45 = vector.multi_reduction <add>, %42, %cst_16 [2] : vector<2x4x8xf32> to vector<2x4xf32>
    %46 = vector.shape_cast %45 : vector<2x4xf32> to vector<2x4x1xf32>
    %47 = arith.addf %46, %44 : vector<2x4x1xf32>
    %cst_17 = arith.constant 1.000000e+00 : f32
    %48 = vector.broadcast %cst_17 : f32 to vector<2x4x1xf32>
    %49 = arith.divf %48, %47 : vector<2x4x1xf32>
    %50 = vector.broadcast %49 : vector<2x4x1xf32> to vector<2x4x8xf32>
    %51 = arith.mulf %42, %50 : vector<2x4x8xf32>
    %52 = arith.mulf %44, %49 : vector<2x4x1xf32>
    %cst_18 = arith.constant dense<0xFF800000> : vector<2x8xf32>
    %53 = vector.multi_reduction <maximumf>, %22, %cst_18 [1] : vector<2x4x8xf32> to vector<2x8xf32>
    %54 = vector.shape_cast %53 : vector<2x8xf32> to vector<2x1x8xf32>
    %55 = arith.maximumf %54, %34 : vector<2x1x8xf32>
    %56 = vector.broadcast %55 : vector<2x1x8xf32> to vector<2x4x8xf32>
    %57 = arith.subf %22, %56 : vector<2x4x8xf32>
    %58 = math.exp %57 : vector<2x4x8xf32>
    %59 = arith.subf %34, %55 : vector<2x1x8xf32>
    %60 = math.exp %59 : vector<2x1x8xf32>
    %cst_19 = arith.constant dense<0.000000e+00> : vector<2x8xf32>
    %61 = vector.multi_reduction <add>, %58, %cst_19 [1] : vector<2x4x8xf32> to vector<2x8xf32>
    %62 = vector.shape_cast %61 : vector<2x8xf32> to vector<2x1x8xf32>
    %63 = arith.addf %62, %60 : vector<2x1x8xf32>
    %cst_20 = arith.constant 1.000000e+00 : f32
    %64 = vector.broadcast %cst_20 : f32 to vector<2x1x8xf32>
    %65 = arith.divf %64, %63 : vector<2x1x8xf32>
    %66 = vector.broadcast %65 : vector<2x1x8xf32> to vector<2x4x8xf32>
    %67 = arith.mulf %58, %66 : vector<2x4x8xf32>
    %68 = arith.mulf %60, %65 : vector<2x1x8xf32>
    %69 = tpu.transpose %68, [0, 2, 1] : vector<2x1x8xf32> -> vector<2x8x1xf32>
    "tpu.trace_start"() <{level = 10 : i32, message = "buv,bvf->buf"}> : () -> ()
    %cst_21 = arith.constant dense<0.000000e+00> : vector<2x4x32xf32>
    %70 = tpu.matmul %51, %36, %cst_21 {dimension_numbers = #tpu.dot_dimension_numbers<[2], [1], [1], [2], [0, 0, 0, 1, 1, 2], [0], [0]>} : vector<2x4x8xf32>, vector<2x8x32xf32>, vector<2x4x32xf32> -> vector<2x4x32xf32>
    "tpu.trace_stop"() : () -> ()
    %71 = vector.broadcast %52 : vector<2x4x1xf32> to vector<2x4x32xf32>
    %72 = arith.mulf %35, %71 : vector<2x4x32xf32>
    %73 = arith.addf %70, %72 : vector<2x4x32xf32>
    "tpu.trace_start"() <{level = 10 : i32, message = "buv,buf->bvf"}> : () -> ()
    %cst_22 = arith.constant dense<0.000000e+00> : vector<2x8x32xf32>
    %74 = tpu.matmul %67, %35, %cst_22 {dimension_numbers = #tpu.dot_dimension_numbers<[1], [1], [2], [2], [0, 0, 0, 2, 1, 2], [0], [0]>} : vector<2x4x8xf32>, vector<2x4x32xf32>, vector<2x8x32xf32> -> vector<2x8x32xf32>
    "tpu.trace_stop"() : () -> ()
    %75 = vector.broadcast %69 : vector<2x8x1xf32> to vector<2x8x32xf32>
    %76 = arith.mulf %75, %36 : vector<2x8x32xf32>
    %77 = arith.addf %74, %76 : vector<2x8x32xf32>
    %78 = tpu.concatenate %73, %77 in 1 : vector<2x4x32xf32>, vector<2x8x32xf32> -> vector<2x12x32xf32>
    %cst_23 = arith.constant 0.000000e+00 : f32
    %79 = vector.broadcast %cst_23 : f32 to vector<2x12x32xf32>
    %80 = arith.cmpf ogt, %78, %79 : vector<2x12x32xf32>
    %81 = math.exp %78 : vector<2x12x32xf32>
    %cst_24 = arith.constant 1.000000e+00 : f32
    %82 = vector.broadcast %cst_24 : f32 to vector<2x12x32xf32>
    %83 = arith.subf %81, %82 : vector<2x12x32xf32>
    %84 = arith.select %80, %78, %83 : vector<2x12x32xi1>, vector<2x12x32xf32>
    %c0_25 = arith.constant 0 : index
    %c0_26 = arith.constant 0 : index
    %c0_27 = arith.constant 0 : index
    %85 = vector.load %arg5[%c0_25, %c0_26, %c0_27] : memref<2x12x32xf32, #tpu.memory_space<vmem>>, vector<2x12x32xf32>
    tpu.vector_store %arg5[%c0_25, %c0_26, %c0_27], %84 {strides = array<i32>} : memref<2x12x32xf32, #tpu.memory_space<vmem>>, vector<2x12x32xf32>,
    return
  }
  func.func @transform_0(%arg0: i32) -> (i32, i32) {
    %c0_i32 = arith.constant 0 : i32
    %c0_i32_0 = arith.constant 0 : i32
    return %arg0, %c0_i32 : i32, i32
  }
  func.func @transform_1(%arg0: i32) -> (i32, i32) {
    %c0_i32 = arith.constant 0 : i32
    %c0_i32_0 = arith.constant 0 : i32
    %c0_i32_1 = arith.constant 0 : i32
    return %c0_i32, %c0_i32_0 : i32, i32
  }
  func.func @transform_2(%arg0: i32) -> (i32, i32) {
    %c0_i32 = arith.constant 0 : i32
    %c0_i32_0 = arith.constant 0 : i32
    %c0_i32_1 = arith.constant 0 : i32
    return %c0_i32, %c0_i32_0 : i32, i32
  }
  func.func @transform_3(%arg0: i32) -> (i32, i32, i32) {
    %c0_i32 = arith.constant 0 : i32
    %c0_i32_0 = arith.constant 0 : i32
    %c0_i32_1 = arith.constant 0 : i32
    return %arg0, %c0_i32, %c0_i32_0 : i32, i32, i32
  }
  func.func @transform_4(%arg0: i32) -> (i32, i32, i32) {
    %c0_i32 = arith.constant 0 : i32
    %c0_i32_0 = arith.constant 0 : i32
    %c0_i32_1 = arith.constant 0 : i32
    return %arg0, %c0_i32, %c0_i32_0 : i32, i32, i32
  }
}

</mosaic_0001>

<bundles_post_ra>
// kernel: tpu_custom_call.1
= control target key start
LH: loop header
LB: loop body
LE: loop exit
PB: predicated region body
PF: predicated region fallthrough
CT: control target
= control target key end

     0   :  { %v1109_v0 = vmov 0.0   ;;  %vm1110_vm0 = vmmov 0   ;;  %vm28_vm1 = vcmask 130048   ;;  %v1111_v10 = vmov 0   ;;  %s1285_s1 = inlined_call_operand.vmem [shape: f32[16,32], index: 1, kind: input, shape index: {}]   ;;  %s1286_s0 = inlined_call_operand.vmem [shape: f32[24,16], index: 0, kind: input, shape index: {}]   ;;  %s1287_s2 = inlined_call_operand.vmem [shape: f32[32,2], index: 2, kind: input, shape index: {}]   ;;  %s1288_s3 = inlined_call_operand.vmem [shape: f32[2,4,8], index: 3, kind: input, shape index: {}]   ;;  %s1289_s4 = inlined_call_operand.vmem [shape: f32[2,12,32], index: 4, kind: output, shape index: {}]  }
   0x1   :  { %1020 = vmatprep.subr.mxu0 %v1109_v0  ;;  %v21_v1 = vld [vmem:[%s1285_s1 + $0x8] sm:$0xff]  ;;  %v20_v2 = vld [vmem:[%s1285_s1] sm:$0xff]  ;;  %1024 = vmatprep.mubr.msk.f32.mxu0 %vm1110_vm0, %v1109_v0  ;;  %v25_v4 = vld [vmem:[%s1287_s2 + $0x18] sm:$0xff]  ;;  %vm118_vm2 = vcmask 261120   ;;  %vm767_vm3 = vcmask 1043456   ;;  %v294_v32 = vlaneseq  ;;  %vm355_vm5 = vcmask 60416  }
   0x2   :  { %1021 = vmatpush3.msra.mxu0 %v21_v1  ;;  %v17_v3 = vld [vmem:[%s1286_s0] sm:$0xff]  ;;  %1033 = vmatprep.subr.mxu1 %v1109_v0  ;;  %v24_v5 = vld [vmem:[%s1287_s2 + $0x10] sm:$0xff]  ;;  %v23_v6 = vld [vmem:[%s1287_s2 + $0x8] sm:$0xff]  ;;  %v1112_v30 = vmov 839922192   ;;  %vm570_vm11 = vcmask 64512  }
   0x3   :  { %1022 = vmatprep.subr.mxu0 %v1109_v0  ;;  %1034 = vmatpush3.msra.mxu1 %v25_v4  ;;  %v18_v7 = vld [vmem:[%s1286_s0 + $0x8] sm:$0xff]  ;;  %v22_v8 = vld [vmem:[%s1287_s2] sm:$0xff]  ;;  %v19_v9 = vld [vmem:[%s1286_s0 + $0x10] sm:$0xff]  ;;  %v292_v31 = vunpack.c.l.s4 %v1112_v30  ;;  %v295_v34 = vshrl.u32 %v294_v32, 7  ;;  %vm763_vm12 = vcmask 31744   ;;  %vm976_vm13 = vcmask 257024  }
   0x4   :  { %1023 = vmatpush3.msra.mxu0 %v20_v2  ;;  %1035 = vmatprep.subr.mxu1 %v1109_v0  ;;  %v26_v44 = vld [vmem:[%s1288_s3] sm:$0xf]  ;;  %v27_v55 = vld [vmem:[%s1288_s3 + $0x4] sm:$0xf]  ;;  %s1113_s3 = smov 127  }
   0x5   :  { %1025 = vmatmul.mubr.msk.f32.vlgmr.msra.gmra.mxu0 %vm28_vm1, %v17_v3  ;;  %1036 = vmatpush3.msra.mxu1 %v24_v5  ;;  %v293_v33 = vunpack.c.0.s8 %v292_v31  ;;  %v311_v36 = vsub.s32 1, %v295_v34 }
   0x6   :  { %1027 = vmatprep.mubr.msk.f32.mxu0 %vm1110_vm0, %v1109_v0  ;;  %1037 = vmatprep.subr.mxu1 %v1109_v0 }
   0x7   :  { %1038 = vmatpush3.msra.mxu1 %v23_v6  ;;  %1041 = vmatprep.mubr.msk.f32.mxu1 %vm1110_vm0, %v1109_v0  ;;  %v1222_v35 = vsub.s32 %v293_v33, %v295_v34  ;;  %v428_v6 = vsub.s32 0, %v295_v34 }
   0x8   :  { %1039 = vmatprep.subr.mxu1 %v1109_v0  ;;  %1050 = vmatprep.subr.mxu0 %v1109_v0 }
   0x9   :  { %1028 = vmatmul.mubr.msk.f32.gmra.mxu0 %vm28_vm1, %v18_v7  ;;  %1040 = vmatpush3.msra.mxu1 %v22_v8 }
   0xa   :  { %1030 = vmatprep.mubr.msk.f32.mxu0 %vm1110_vm0, %v1109_v0  ;;  %1060 = vmatprep.subr.mxu1 %v1109_v0 }
   0xb   :  { %1075 = vset.pattern.permute.xlu0 %v1111_v10 }
   0xd   :  { %1031 = vmatmul.mubr.msk.f32.gmra.mxu0 %vm28_vm1, %v19_v9 }
   0xe   :  { %1052 = vmatprep.mubr.msk.f32.mxu0 %vm1110_vm0, %v1109_v0 }
  0xc5   :  { %v1187_v11 = vpop.f32.mrf.mxu0 }
  0xc6   :  { %1042 = vmatmul.mubr.msk.f32.vlgmr.msra.gmra.mxu1 %vm118_vm2, %v1187_v11  ;;  %v208_v13 = vcombine.high %v1187_v11, %v1187_v11 }
  0xc7   :  { %1061 = vmatpush3.msk.msra.mxu1 %vm767_vm3, %v1187_v11  ;;  %v1026_v12 = vpop.f32.mrf.mxu0  ;;  %1044 = vmatprep.mubr.msk.f32.mxu1 %vm1110_vm0, %v1109_v0 }
  0xc9   :  { %v1197_v14 = vpop.f32.mrf.mxu0 }
  0xca   :  { %v1200_v15 = vcombine.low %v208_v13, %v1197_v14  ;;  %1045 = vmatmul.mubr.msk.f32.gmra.mxu1 %vm118_vm2, %v1197_v14 }
  0xcb   :  { %v1029_v16 = vpop.f32.mrf.mxu0  ;;  %1047 = vmatprep.mubr.msk.f32.mxu1 %vm1110_vm0, %v1109_v0 }
  0xcc   :  { %1051 = vmatpush3.msra.mxu0 %v1200_v15 }
  0xcd   :  { %v1207_v17 = vpop.f32.mrf.mxu0  ;;  %1055 = vmatprep.subr.mxu0 %v1109_v0 }
  0xce   :  { %1048 = vmatmul.mubr.msk.f32.gmra.mxu1 %vm118_vm2, %v1207_v17 }
  0xcf   :  { %v1032_v18 = vpop.f32.mrf.mxu0  ;;  %1062 = vmatprep.mubr.msk.f32.mxu1 %vm1110_vm0, %v1109_v0 }
 0x186   :  { %v1214_v19 = vpop.f32.mrf.mxu1 }
 0x187   :  { %288 = vperm.xlu0 %1075, %v1214_v19   ;;  %v215_v21 = vcombine.high %v1214_v19, %v1214_v19 }
 0x188   :  { %v1043_v20 = vpop.f32.mrf.mxu1 }
 0x18a   :  { %v199_v22 = vpop.f32.mrf.mxu1 }
 0x18b   :  { %v1219_v23 = vcombine.high %v199_v22, %v199_v22  ;;  %v219_v24 = vcombine.low %v215_v21, %v199_v22 }
 0x18c   :  { %v1046_v25 = vpop.f32.mrf.mxu1 }
 0x18d   :  { %223 = vxpose.xlu1.b32.start.end [1/1] (short) (narrow) %v219_v24, 8  ;;  %299 = vperm.xlu0 %1075, %v1219_v23  }
 0x18e   :  { %v204_v26 = vpop.f32.mrf.mxu1 }
 0x18f   :  { %v217_v27 = vcombine.high %v204_v26, %v204_v26 }
 0x190   :  { %v1049_v28 = vpop.f32.mrf.mxu1 }
 0x191   :  { %v220_v29 = vcombine.low %v204_v26, %v217_v27 }
 0x193   :  { %255 = vxpose.xlu1.b32.start.end [1/1] (short) (narrow) %v220_v29, 8 }
 0x1b1   :  { %1076 = vset.pattern.permute.xlu1 %v1111_v10 }
 0x202   :  { %v289_v37 = vpop.permute.xlu0 %288 }
 0x203   :  { %v297_v39 = vrot.slane %v289_v37, %v1222_v35 }
 0x208   :  { %v300_v42 = vpop.permute.xlu0 %299 }
 0x209   :  { %v239_v38 = vpop.trf.xlu1  ;;  %v308_v46 = vrot.slane %v300_v42, %v1222_v35 }
 0x20a   :  { %v312_v40 = vrot.slane %v239_v38, %v311_v36  ;;  %v343_v51 = vrot.slane %v239_v38, 1 }
 0x20c   :  { %v317_v41 = vadd.f32 %v312_v40, %v297_v39  ;;  %v347_v58 = vadd.f32 %v343_v51, %v239_v38 }
 0x20e   :  { %v321_v43 = vmul.f32 0.2, %v317_v41  ;;  %vm319_vm4 = vcmp.gt.f32.partialorder %v317_v41, 0.0  ;;  %v351_v2 = vmul.f32 0.2, %v347_v58  ;;  %vm349_vm7 = vcmp.gt.f32.partialorder %v347_v58, 0.0 }
 0x20f   :  { %v271_v45 = vpop.trf.xlu1 }
 0x210   :  { %v316_v47 = vrot.slane %v271_v45, %v311_v36  ;;  %v323_v48 = vsel %vm319_vm4, %v317_v41, %v321_v43  ;;  %v344_v61 = vrot.slane %v271_v45, 1  ;;  %v353_v9 = vsel %vm349_vm7, %v347_v58, %v351_v2 }
 0x211   :  { %v1229_v49 = vadd.f32 %v323_v48, %v26_v44 }
 0x212   :  { %v318_v50 = vadd.f32 %v316_v47, %v308_v46  ;;  %v348_v5 = vadd.f32 %v344_v61, %v271_v45 }
 0x213   :  { %v356_v52 = vsel %vm355_vm5, %v1229_v49, -inf }
 0x214   :  { %v322_v53 = vmul.f32 0.2, %v318_v50  ;;  %v412_v54 = vrot.slane %v356_v52, 4  ;;  %357 = vmax.xlane.f32.xlu0 %v356_v52  ;;  %vm320_vm6 = vcmp.gt.f32.partialorder %v318_v50, 0.0  ;;  %v352_v13 = vmul.f32 0.2, %v348_v5 }
 0x215   :  { %vm350_vm8 = vcmp.gt.f32.partialorder %v348_v5, 0.0 }
 0x216   :  { %v413_v56 = vmax.f32 %v356_v52, %v412_v54  ;;  %v324_v57 = vsel %vm320_vm6, %v318_v50, %v322_v53  ;;  %v354_v24 = vsel %vm350_vm8, %v348_v5, %v352_v13 }
 0x217   :  { %v1236_v59 = vadd.f32 %v324_v57, %v27_v55 }
 0x218   :  { %v414_v60 = vrot.slane %v413_v56, 2 }
 0x219   :  { %v359_v62 = vsel %vm355_vm5, %v1236_v59, -inf }
 0x21a   :  { %v415_v63 = vmax.f32 %v413_v56, %v414_v60  ;;  %360 = vmax.xlane.f32.xlu1 %v359_v62  ;;  %v418_v1 = vrot.slane %v359_v62, 4 }
 0x21c   :  { %v416_v3 = vrot.slane %v415_v63, 1  ;;  %v419_v4 = vmax.f32 %v359_v62, %v418_v1 }
 0x21e   :  { %v417_v7 = vmax.f32 %v415_v63, %v416_v3  ;;  %v420_v8 = vrot.slane %v419_v4, 2 }
 0x220   :  { %v424_v10 = vmax.f32 %v417_v7, %v353_v9  ;;  %v421_v12 = vmax.f32 %v419_v4, %v420_v8 }
 0x222   :  { %v429_v16 = vrot.slane %v424_v10, %v428_v6  ;;  %v440_v18 = vsub.f32 %v353_v9, %v424_v10  ;;  %v422_v20 = vrot.slane %v421_v12, 1 }
 0x224   :  { %v434_v21 = vsub.f32 %v1229_v49, %v429_v16  ;;  %v423_v22 = vmax.f32 %v421_v12, %v422_v20  ;;  %v442_v30 = vmul.f32 1.442695, %v440_v18 }
 0x226   :  { %v436_v25 = vmul.f32 1.442695, %v434_v21  ;;  %v425_v26 = vmax.f32 %v423_v22, %v354_v24 }
 0x228   :  { %1077 = vpow2.f32 %v436_v25  ;;  %v433_v27 = vrot.slane %v425_v26, %v428_v6  ;;  %v441_v31 = vsub.f32 %v354_v24, %v425_v26 }
 0x22a   :  { %v435_v28 = vsub.f32 %v1236_v59, %v433_v27  ;;  %327 = vrot.lane.b32.xlu0 %v1214_v19, %s1113_s3  ;;  %v444_v36 = vmul.f32 1.442695, %v441_v31 }
 0x22b   :  { %329 = vrot.lane.b32.xlu1 %v1219_v23, %s1113_s3 }
 0x22c   :  { %v438_v29 = vmul.f32 1.442695, %v435_v28 }
 0x22e   :  { %1079 = vpow2.f32 %v438_v29 }
 0x22f   :  { %1081 = vpow2.f32 %v442_v30 }
 0x230   :  { %1083 = vpow2.f32 %v444_v36 }
 0x235   :  { %v1078_v32 = vpop.eup %1077 }
 0x236   :  { %v446_v33 = vsel %vm355_vm5, %v1078_v32, 0.0 }
 0x237   :  { %v447_v34 = vrot.slane %v446_v33, 4 }
 0x239   :  { %v448_v37 = vadd.f32 %v447_v34, %v446_v33 }
 0x23b   :  { %v1080_v38 = vpop.eup %1079  ;;  %v449_v39 = vrot.slane %v448_v37, 2 }
 0x23c   :  { %v453_v40 = vsel %vm355_vm5, %v1080_v38, 0.0  ;;  %v1082_v47 = vpop.eup %1081 }
 0x23d   :  { %v450_v41 = vadd.f32 %v449_v39, %v448_v37  ;;  %v454_v42 = vrot.slane %v453_v40, 4  ;;  %v1084_v53 = vpop.eup %1083 }
 0x23f   :  { %v451_v43 = vrot.slane %v450_v41, 1  ;;  %v455_v44 = vadd.f32 %v454_v42, %v453_v40  ;;  %v210_v40 = vcombine.high %v1207_v17, %v1207_v17 }
 0x241   :  { %v452_v45 = vadd.f32 %v451_v43, %v450_v41  ;;  %v456_v46 = vrot.slane %v455_v44, 2  ;;  %v644_v43 = vcombine.low %v1207_v17, %v210_v40 }
 0x243   :  { %v460_v48 = vadd.f32 %v1082_v47, %v452_v45  ;;  %v457_v50 = vadd.f32 %v456_v46, %v455_v44  ;;  %v209_v46 = vcombine.high %v1197_v14, %v1197_v14 }
 0x245   :  { %1085 = vrcp.f32 %v460_v48  ;;  %v458_v51 = vrot.slane %v457_v50, 1 }
 0x247   :  { %v459_v52 = vadd.f32 %v458_v51, %v457_v50 }
 0x249   :  { %v461_v54 = vadd.f32 %v1084_v53, %v459_v52 }
 0x24b   :  { %1087 = vrcp.f32 %v461_v54 }
 0x252   :  { %v1086_v55 = vpop.eup %1085 }
 0x253   :  { %v469_v56 = vrot.slane %v1086_v55, %v428_v6  ;;  %v476_v57 = vmul.f32 %v1086_v55, %v1082_v47 }
 0x255   :  { %v474_v58 = vmul.f32 %v1078_v32, %v469_v56 }
 0x258   :  { %v1088_v60 = vpop.eup %1087 }
 0x259   :  { %v473_v61 = vrot.slane %v1088_v60, %v428_v6  ;;  %v477_v39 = vmul.f32 %v1088_v60, %v1084_v53 }
 0x25b   :  { %v475_v62 = vmul.f32 %v1080_v38, %v473_v61 }
 0x29d   :  { %v358_v63 = vpop.xlane.xlu0 %357 }
 0x2a1   :  { %v328_v1 = vpop.permute.xlu0 %327 }
 0x2a2   :  { %v333_v2 = vadd.f32 %v328_v1, %v1214_v19 }
 0x2a3   :  { %v361_v3 = vpop.xlane.xlu1 %360 }
 0x2a4   :  { %vm335_vm9 = vcmp.gt.f32.partialorder %v333_v2, 0.0  ;;  %v337_v4 = vmul.f32 0.2, %v333_v2 }
 0x2a6   :  { %v339_v5 = vsel %vm335_vm9, %v333_v2, %v337_v4 }
 0x2a7   :  { %v330_v7 = vpop.permute.xlu1 %329  ;;  %v362_v8 = vmax.f32 %v358_v63, %v339_v5 }
 0x2a8   :  { %v334_v9 = vadd.f32 %v330_v7, %v1219_v23 }
 0x2a9   :  { %366 = vperm.xlu0 %1075, %v362_v8   ;;  %v380_v10 = vsub.f32 %v339_v5, %v362_v8 }
 0x2aa   :  { %vm336_vm10 = vcmp.gt.f32.partialorder %v334_v9, 0.0  ;;  %v338_v12 = vmul.f32 0.2, %v334_v9 }
 0x2ab   :  { %v382_v28 = vmul.f32 1.442695, %v380_v10 }
 0x2ac   :  { %v340_v13 = vsel %vm336_vm10, %v334_v9, %v338_v12 }
 0x2ad   :  { %v363_v16 = vmax.f32 %v361_v3, %v340_v13 }
 0x2af   :  { %371 = vperm.xlu1 %1076, %v363_v16   ;;  %v381_v6 = vsub.f32 %v340_v13, %v363_v16 }
 0x2b1   :  { %v384_v29 = vmul.f32 1.442695, %v381_v6 }
 0x324   :  { %v367_v18 = vpop.permute.xlu0 %366 }
 0x325   :  { %v374_v20 = vsub.f32 %v1229_v49, %v367_v18 }
 0x327   :  { %v376_v19 = vmul.f32 1.442695, %v374_v20 }
 0x329   :  { %1089 = vpow2.f32 %v376_v19 }
 0x32a   :  { %v372_v21 = vpop.permute.xlu1 %371 }
 0x32b   :  { %v375_v22 = vsub.f32 %v1236_v59, %v372_v21 }
 0x32d   :  { %v378_v24 = vmul.f32 1.442695, %v375_v22 }
 0x32f   :  { %1091 = vpow2.f32 %v378_v24 }
 0x330   :  { %1093 = vpow2.f32 %v382_v28 }
 0x331   :  { %1095 = vpow2.f32 %v384_v29 }
 0x336   :  { %v1090_v25 = vpop.eup %1089 }
 0x337   :  { %v386_v23 = vsel %vm355_vm5, %v1090_v25, 0.0 }
 0x338   :  { %387 = vadd.xlane.f32.xlu0 %v386_v23 }
 0x33c   :  { %v1092_v26 = vpop.eup %1091 }
 0x33d   :  { %v389_v27 = vsel %vm355_vm5, %v1092_v26, 0.0  ;;  %v1094_v49 = vpop.eup %1093 }
 0x33e   :  { %390 = vadd.xlane.f32.xlu1 %v389_v27  ;;  %v1096_v32 = vpop.eup %1095 }
 0x3c1   :  { %v388_v30 = vpop.xlane.xlu0 %387 }
 0x3c2   :  { %v392_v31 = vadd.f32 %v1094_v49, %v388_v30 }
 0x3c4   :  { %1097 = vrcp.f32 %v392_v31 }
 0x3c7   :  { %v391_v59 = vpop.xlane.xlu1 %390 }
 0x3c8   :  { %v393_v33 = vadd.f32 %v1096_v32, %v391_v59 }
 0x3ca   :  { %1099 = vrcp.f32 %v393_v33 }
 0x3d1   :  { %v1098_v34 = vpop.eup %1097 }
 0x3d2   :  { %400 = vperm.xlu0 %1075, %v1098_v34   ;;  %v410_v36 = vmul.f32 %v1098_v34, %v1094_v49 }
 0x3d7   :  { %v1100_v37 = vpop.eup %1099 }
 0x3d8   :  { %405 = vperm.xlu1 %1076, %v1100_v37   ;;  %v411_v38 = vmul.f32 %v1100_v37, %v1096_v32 }
 0x3f0   :  { %731 = vxpose.xlu0.b32.start.end [1/1] (short) (narrow) %v474_v58, 8 }
 0x3f4   :  { %478 = vxpose.xlu0.b32.start.end [1/1] (short) (narrow) %v476_v57, 8 }
 0x3f8   :  { %510 = vxpose.xlu0.b32.start.end [1/1] (short) (narrow) %v477_v39, 8 }
 0x401   :  { %840 = vxpose.xlu1.b32.start.end [1/1] (short) (narrow) %v475_v62, 8 }
 0x421   :  { %544 = vperm.xlu0 %1075, %v410_v36  }
 0x44d   :  { %v401_v41 = vpop.permute.xlu0 %400 }
 0x44e   :  { %v408_v42 = vmul.f32 %v1090_v25, %v401_v41 }
 0x450   :  { %1053 = vmatmul.mubr.msk.f32.vlgmr.msra.gmra.mxu0 %vm570_vm11, %v408_v42 }
 0x451   :  { %1056 = vmatpush3.msra.mxu0 %v644_v43  ;;  %1057 = vmatprep.mubr.msk.f32.mxu0 %vm1110_vm0, %v1109_v0 }
 0x452   :  { %1065 = vmatprep.subr.mxu0 %v1109_v0 }
 0x453   :  { %v406_v44 = vpop.permute.xlu1 %405 }
 0x454   :  { %v409_v45 = vmul.f32 %v1092_v26, %v406_v44 }
 0x456   :  { %1058 = vmatmul.mubr.msk.f32.vlgmr.msra.gmra.mxu0 %vm570_vm11, %v409_v45 }
 0x457   :  { %1066 = vmatpush3.msk.msra.mxu0 %vm767_vm3, %v209_v46  ;;  %1067 = vmatprep.mubr.msk.f32.mxu0 %vm1110_vm0, %v1109_v0 }
 0x46c   :  { %v747_v17 = vpop.trf.xlu0 }
 0x46d   :  { %1063 = vmatmul.mubr.msk.f32.vlgmr.msra.gmra.mxu1 %vm763_vm12, %v747_v17 }
 0x470   :  { %v494_v47 = vpop.trf.xlu0 }
 0x471   :  { %721 = vperm.xlu1 %1076, %v494_v47  }
 0x474   :  { %v526_v48 = vpop.trf.xlu0 }
 0x475   :  { %556 = vperm.xlu1 %1076, %v411_v38  }
 0x479   :  { %726 = vperm.xlu1 %1076, %v526_v48  }
 0x47d   :  { %v856_v50 = vpop.trf.xlu1 }
 0x47e   :  { %1068 = vmatmul.mubr.msk.f32.vlgmr.msra.gmra.mxu0 %vm763_vm12, %v856_v50 }
 0x49c   :  { %v545_v54 = vpop.permute.xlu0 %544 }
 0x49d   :  { %v553_v56 = vrot.slane %v545_v54, %v1222_v35 }
 0x49f   :  { %v566_v58 = vmul.f32 %v553_v56, %v1187_v11 }
 0x4ec   :  { %v722_v55 = vpop.permute.xlu1 %721 }
 0x4ed   :  { %v729_v0 = vmul.f32 %v722_v55, %v1200_v15 }
 0x4f0   :  { %v557_v4 = vpop.permute.xlu1 %556 }
 0x4f1   :  { %v565_v7 = vrot.slane %v557_v4, %v1222_v35 }
 0x4f3   :  { %v567_v15 = vmul.f32 %v565_v7, %v209_v46 }
 0x4f4   :  { %v727_v5 = vpop.permute.xlu1 %726 }
 0x4f5   :  { %v730_v8 = vmul.f32 %v727_v5, %v644_v43 }
 0x510   :  { %v640_v51 = vpop.f32.mrf.mxu0 }
 0x511   :  { %v641_v62 = vadd.f32 %v640_v51, %v566_v58 }
 0x512   :  { %v1054_v52 = vpop.f32.mrf.mxu0 }
 0x516   :  { %v715_v53 = vpop.f32.mrf.mxu0 }
 0x517   :  { %v716_v13 = vadd.f32 %v715_v53, %v567_v15 }
 0x518   :  { %v1059_v14 = vpop.f32.mrf.mxu0 }
 0x52d   :  { %v836_v57 = vpop.f32.mrf.mxu1 }
 0x52e   :  { %v837_v60 = vadd.f32 %v836_v57, %v729_v0 }
 0x52f   :  { %v1064_v61 = vpop.f32.mrf.mxu1 }
 0x530   :  { %v949_v63 = vrot.slane %v837_v60, 4 }
 0x532   :  { %v953_v1 = vsel %vm767_vm3, %v641_v62, %v949_v63  ;;  %v961_v2 = vmul.f32 1.442695, %v949_v63  ;;  %vm956_vm14 = vcmp.gt.f32.partialorder %v949_v63, 0.0 }
 0x533   :  { %v959_v3 = vmul.f32 1.442695, %v953_v1  ;;  %vm955_vm15 = vcmp.gt.f32.partialorder %v953_v1, 0.0 }
 0x534   :  { %1101 = vpow2.f32 %v961_v2 }
 0x535   :  { %1103 = vpow2.f32 %v959_v3 }
 0x53e   :  { %v943_v9 = vpop.f32.mrf.mxu0 }
 0x53f   :  { %v944_v10 = vadd.f32 %v943_v9, %v730_v8 }
 0x540   :  { %v1069_v12 = vpop.f32.mrf.mxu0 }
 0x541   :  { %v1102_v11 = vpop.eup %1101  ;;  %v950_v16 = vrot.slane %v944_v10, 4 }
 0x542   :  { %v1104_v6 = vpop.eup %1103  ;;  %v997_v18 = vadd.f32 -1.0, %v1102_v11 }
 0x543   :  { %v996_v20 = vadd.f32 -1.0, %v1104_v6  ;;  %v954_v19 = vsel %vm767_vm3, %v716_v13, %v950_v16  ;;  %v965_v21 = vmul.f32 1.442695, %v950_v16  ;;  %vm958_vm0 = vcmp.gt.f32.partialorder %v950_v16, 0.0 }
 0x544   :  { %v972_v22 = vsel %vm956_vm14, %v949_v63, %v997_v18  ;;  %v963_v24 = vmul.f32 1.442695, %v954_v19  ;;  %vm957_vm1 = vcmp.gt.f32.partialorder %v954_v19, 0.0 }
 0x545   :  { %v971_v35 = vsel %vm955_vm15, %v953_v1, %v996_v20  ;;  %977 = vst.msk [vmem:[%s1289_s4 + $0x8] sm:$0xf] %vm976_vm13, %v972_v22  ;;  %1105 = vpow2.f32 %v965_v21 }
 0x546   :  { %975 = vst.msk [vmem:[%s1289_s4] sm:$0xff] %vm118_vm2, %v971_v35  ;;  %1107 = vpow2.f32 %v963_v24 }
 0x552   :  { %v1106_v25 = vpop.eup %1105 }
 0x553   :  { %v1108_v23 = vpop.eup %1107  ;;  %v999_v26 = vadd.f32 -1.0, %v1106_v25 }
 0x554   :  { %v998_v27 = vadd.f32 -1.0, %v1108_v23 }
 0x555   :  { %v974_v28 = vsel %vm958_vm0, %v950_v16, %v999_v26 }
 0x556   :  { %v973_v29 = vsel %vm957_vm1, %v954_v19, %v998_v27  ;;  %979 = vst.msk [vmem:[%s1289_s4 + $0x18] sm:$0xf] %vm976_vm13, %v974_v28 }
 0x557   :  { %978 = vst.msk [vmem:[%s1289_s4 + $0x10] sm:$0xff] %vm118_vm2, %v973_v29 }

</bundles_post_ra>
